<compile_context>
chip_gen: v7x
topology: tpu7x:2x2x1
jax: 0.10.0
libtpu: 0.0.40
codegen_flags: <defaults>
</compile_context>

<pallas_src>
import functools

import jax
import jax.numpy as jnp
from jax.experimental import pallas as pl
from jax.experimental.pallas import tpu as pltpu


# -----------------------------------------------------------------------------
# Kernels
# -----------------------------------------------------------------------------
def _pad_norm_fused_kernel(x_ref, o_ref, *, eps, t_in):
    """Whole tensor in one block: global max -> scale -> append 2 zero frames."""
    x = x_ref[...].astype(jnp.float32)
    # The two appended zero frames take part in the global max -> clamp at 0.
    max_val = jnp.maximum(jnp.max(x), 0.0)
    inv = 1.0 / (max_val + eps)          # one scalar reciprocal, then one vmul per vreg
    pad = jnp.zeros((x.shape[0], o_ref.shape[1] - t_in), jnp.float32)
    # Build the padded tile in registers and issue a single store.
    o_ref[...] = jnp.concatenate([x * inv, pad], axis=-1).astype(o_ref.dtype)


def _tile_max_kernel(x_ref, m_ref, *, rows_total, tile_rows):
    """Fallback pass 1: per-tile max ('parallel' grid axis; tail rows masked)."""
    i = pl.program_id(0)
    x = x_ref[...].astype(jnp.float32)
    row_ids = jax.lax.broadcasted_iota(jnp.int32, x.shape, 0) + i * tile_rows
    # Out-of-range tail rows hold unspecified data -> force them to 0, which is
    # also the correct floor because the appended zero frames join the max.
    x = jnp.where(row_ids < rows_total, x, 0.0)
    m_ref[...] = jnp.max(x).reshape(1, 1, 1)


def _norm_pad_kernel(x_ref, inv_ref, o_ref, *, t_in):
    """Fallback pass 2: scale one row tile and append the 2 zero frames."""
    inv = inv_ref[0]                      # scalar read from SMEM (free sld slot)
    scaled = x_ref[...].astype(jnp.float32) * inv
    pad = jnp.zeros((scaled.shape[0], o_ref.shape[1] - t_in), jnp.float32)
    o_ref[...] = jnp.concatenate([scaled, pad], axis=-1).astype(o_ref.dtype)


# -----------------------------------------------------------------------------
# Wrapper helpers
# -----------------------------------------------------------------------------
def _sublane(dtype):
    itemsize = jnp.dtype(dtype).itemsize
    return max(8, 32 // max(itemsize, 1))   # f32: 8, bf16: 16, int8: 32


def _tile_bytes(tile_rows, t_in, t_out, dtype, buffers):
    """VMEM footprint of one (input, output) tile pair for `buffers` pipeline buffers."""
    itemsize = jnp.dtype(dtype).itemsize
    sub = _sublane(dtype)
    pad_rows = pl.cdiv(tile_rows, sub) * sub
    in_lanes = pl.cdiv(t_in, 128) * 128
    out_lanes = pl.cdiv(t_out, 128) * 128
    return buffers * pad_rows * (in_lanes + out_lanes) * itemsize


def _vmem_budget_and_limit():
    """Per-generation fused-path budget and scoped-VMEM limit (bytes)."""
    try:
        cap = int(getattr(pltpu.get_tpu_info(), "vmem_capacity_bytes", 64 << 20))
    except Exception:  # CPU / interpret / older runtimes
        cap = 64 << 20
    if cap >= (96 << 20):
        # v5e / v6e: 128 MiB physical, one TensorCore -> keep the 2x-HBM-traffic
        # fused path alive as long as possible (saves a full extra read of x).
        return 96 << 20, 112 << 20
    # v7x-like: 64 MiB per TC but two TCs -> cap the single-TC fused path and let
    # the 'parallel' two-pass path (both cores streaming tiles) take over earlier.
    return 24 << 20, 48 << 20


# -----------------------------------------------------------------------------
# Public entry point
# -----------------------------------------------------------------------------
def pad_layer(x, eps=1e-5, *, vmem_budget_bytes=None):
    """x: [batch, features, time] -> [batch, features, time+2], globally max-normalized."""
    B, F, T = x.shape
    T_out = T + 2
    rows = B * F
    x2 = x.reshape(rows, T)          # free view: fold (batch, features) into sublanes
    out2_shape = jax.ShapeDtypeStruct((rows, T_out), x.dtype)

    budget, vmem_limit = _vmem_budget_and_limit()
    if vmem_budget_bytes is not None:
        budget = vmem_budget_bytes
        vmem_limit = max(vmem_limit, min(2 * budget, 112 << 20))

    # Footprint is charged at 2 pipeline buffers (pallas_call's default double
    # buffering) even though grid=(1,) never overlaps anything.
    # TODO(synk): move the fast path to pipeline_mode=pl.Buffered(1) once single
    # buffering is exercised on every target runtime; that doubles the tensor
    # size that stays on the 2x-traffic fused path.
    if _tile_bytes(rows, T, T_out, x.dtype, buffers=2) <= budget:
        # ------- Fast path: one launch, one grid step, whole tensor in VMEM -------
        out2 = pl.pallas_call(
            functools.partial(_pad_norm_fused_kernel, eps=eps, t_in=T),
            out_shape=out2_shape,
            grid=(1,),
            in_specs=[pl.BlockSpec((rows, T), lambda i: (0, 0))],
            out_specs=pl.BlockSpec((rows, T_out), lambda i: (0, 0)),
            compiler_params=pltpu.CompilerParams(
                dimension_semantics=("arbitrary",),
                vmem_limit_bytes=vmem_limit),
        )(x2)
        return out2.reshape(B, F, T_out)

    # ------- Fallback: sublane-aligned row tiles, two 'parallel' passes -------
    sub = _sublane(x.dtype)
    per_row = _tile_bytes(sub, T, T_out, x.dtype, buffers=2) // sub
    tile = max(sub, (budget // per_row) // sub * sub)   # largest multiple of `sub` in budget
    tile = min(tile, pl.cdiv(rows, sub) * sub)
    n_tiles = pl.cdiv(rows, tile)

    # Pass 1: per-tile maxima (both v7x TensorCores stream tiles in parallel).
    tile_max = pl.pallas_call(
        functools.partial(_tile_max_kernel, rows_total=rows, tile_rows=tile),
        out_shape=jax.ShapeDtypeStruct((n_tiles, 1, 1), jnp.float32),
        grid=(n_tiles,),
        in_specs=[pl.BlockSpec((tile, T), lambda i: (i, 0))],
        out_specs=pl.BlockSpec((1, 1, 1), lambda i: (i, 0, 0)),
        compiler_params=pltpu.CompilerParams(
            dimension_semantics=("parallel",),
            vmem_limit_bytes=vmem_limit),
    )(x2)

    # Tiny reduction + one scalar reciprocal outside the kernel; handed to pass 2
    # through SMEM (no (8,128)-padded VMEM tile for a single scalar).
    max_val = jnp.maximum(jnp.max(tile_max), 0.0)      # zero pad frames join the max
    inv = (1.0 / (max_val + eps)).astype(jnp.float32).reshape(1)

    # Pass 2: scale + pad each row tile.
    out2 = pl.pallas_call(
        functools.partial(_norm_pad_kernel, t_in=T),
        out_shape=out2_shape,
        grid=(n_tiles,),
        in_specs=[pl.BlockSpec((tile, T), lambda i: (i, 0)),
                  pl.BlockSpec(memory_space=pltpu.MemorySpace.SMEM)],
        out_specs=pl.BlockSpec((tile, T_out), lambda i: (i, 0)),
        compiler_params=pltpu.CompilerParams(
            dimension_semantics=("parallel",),
            vmem_limit_bytes=vmem_limit),
    )(x2, inv)

    return out2.reshape(B, F, T_out)


def pad_layer_ref(x, eps=1e-5):
    """Pure-JAX reference mirroring the PyTorch forward."""
    xp = jnp.pad(x, ((0, 0), (0, 0), (0, 2)))
    return xp / (jnp.max(xp) + eps)


if __name__ == "__main__":
    # Small shapes consistent with the denoise model: [batch, features, time].
    batch, features, time_size = 2, 257, 12

    key = jax.random.PRNGKey(0)
    x = jax.random.normal(key, (batch, features, time_size), dtype=jnp.float32)

    # Fast path (single launch, single grid step, fused max+scale+pad).
    out = jax.block_until_ready(pad_layer(x))
    ref = pad_layer_ref(x)
    assert out.shape == (batch, features, time_size + 2), out.shape
    assert jnp.allclose(out, ref, rtol=1e-5, atol=1e-6), "fast path != reference"

    # All-negative input: the appended zero frames dominate the global max.
    x_neg = x - 10.0
    out_neg = jax.block_until_ready(pad_layer(x_neg))
    assert jnp.allclose(out_neg, pad_layer_ref(x_neg), rtol=1e-5, atol=1e-6)

    # Force the tiled two-pass fallback (tiny budget): exercises sublane-aligned
    # tiles, tail-row masking and the SMEM scalar handoff.
    out_tiled = jax.block_until_ready(pad_layer(x, vmem_budget_bytes=1 << 20))
    assert jnp.allclose(out_tiled, ref, rtol=1e-5, atol=1e-6)

    print("KERNEL_OK")
</pallas_src>

<mosaic_0001>
module attributes {stable_mosaic.version = 11 : i64} {
  func.func @_pad_norm_fused_kernel(%arg0: i32, %arg1: memref<514x12xf32, #tpu.memory_space<vmem>>, %arg2: memref<514x14xf32, #tpu.memory_space<vmem>>) attributes {dimension_semantics = [#tpu.dimension_semantics<arbitrary>], iteration_bounds = array<i64: 1>, scalar_prefetch = 0 : i64, scratch_operands = 0 : i64, tpu.core_type = #tpu.core_type<tc>, window_params = [{pipeline_mode = #tpu.pipeline_mode<synchronous>, transform_indices = @transform_0, window_bounds = array<i64: 514, 12>}, {pipeline_mode = #tpu.pipeline_mode<synchronous>, transform_indices = @transform_1, window_bounds = array<i64: 514, 14>}]} {
    %c0 = arith.constant 0 : index
    %c0_0 = arith.constant 0 : index
    %0 = vector.load %arg1[%c0, %c0_0] : memref<514x12xf32, #tpu.memory_space<vmem>>, vector<514x12xf32>
    %1 = vector.shape_cast %0 : vector<514x12xf32> to vector<1x514x12xf32>
    %cst = arith.constant dense<0xFF800000> : vector<1xf32>
    %2 = vector.multi_reduction <maximumf>, %1, %cst [1, 2] : vector<1x514x12xf32> to vector<1xf32>
    %3 = vector.shape_cast %2 : vector<1xf32> to vector<1x1x1xf32>
    %4 = vector.extract %3[0, 0, 0] : f32 from vector<1x1x1xf32>
    %cst_1 = arith.constant 0.000000e+00 : f32
    %5 = arith.maximumf %4, %cst_1 : f32
    %cst_2 = arith.constant 9.99999974E-6 : f32
    %6 = arith.addf %5, %cst_2 : f32
    %cst_3 = arith.constant 1.000000e+00 : f32
    %7 = arith.divf %cst_3, %6 : f32
    %cst_4 = arith.constant 0.000000e+00 : f32
    %8 = vector.broadcast %cst_4 : f32 to vector<514x2xf32>
    %9 = vector.broadcast %7 : f32 to vector<514x12xf32>
    %10 = arith.mulf %0, %9 : vector<514x12xf32>
    %11 = tpu.concatenate %10, %8 in 1 : vector<514x12xf32>, vector<514x2xf32> -> vector<514x14xf32>
    %c0_5 = arith.constant 0 : index
    %c0_6 = arith.constant 0 : index
    %12 = vector.load %arg2[%c0_5, %c0_6] : memref<514x14xf32, #tpu.memory_space<vmem>>, vector<514x14xf32>
    tpu.vector_store %arg2[%c0_5, %c0_6], %11 {strides = array<i32>} : memref<514x14xf32, #tpu.memory_space<vmem>>, vector<514x14xf32>,
    return
  }
  func.func @transform_0(%arg0: i32) -> (i32, i32) {
    %c0_i32 = arith.constant 0 : i32
    %c0_i32_0 = arith.constant 0 : i32
    %c0_i32_1 = arith.constant 0 : i32
    return %c0_i32, %c0_i32_0 : i32, i32
  }
  func.func @transform_1(%arg0: i32) -> (i32, i32) {
    %c0_i32 = arith.constant 0 : i32
    %c0_i32_0 = arith.constant 0 : i32
    %c0_i32_1 = arith.constant 0 : i32
    return %c0_i32, %c0_i32_0 : i32, i32
  }
}

</mosaic_0001>

<bundles_post_ra>
// kernel: tpu_custom_call.1
= control target key start
LH: loop header
LB: loop body
LE: loop exit
PB: predicated region body
PF: predicated region fallthrough
CT: control target
= control target key end

     0   :  { %vm73_vm0 = vcmask 97280   ;;  %vm198_vm1 = vcmask 91136   ;;  %s427_s20 = smov 0.0   ;;  %vm349_vm2 = vcmask 113664   ;;  %vm414_vm3 = vcmask 107520   ;;  %s1545_s0 = inlined_call_operand.vmem [shape: f32[514,12], index: 0, kind: input, shape index: {}]   ;;  %s1546_s1 = inlined_call_operand.vmem [shape: f32[514,14], index: 1, kind: output, shape index: {}]  }
   0x1   :  { %v441_v0 = vld [vmem:[%s1545_s0] sm:$0xff]  ;;  %v446_v1 = vld [vmem:[%s1545_s0 + $0x8] sm:$0xff]  ;;  %v451_v2 = vld [vmem:[%s1545_s0 + $0x10] sm:$0xff] }
   0x2   :  { %v456_v3 = vld [vmem:[%s1545_s0 + $0x18] sm:$0xff]  ;;  %v461_v4 = vld [vmem:[%s1545_s0 + $0x20] sm:$0xff]  ;;  %v466_v5 = vld [vmem:[%s1545_s0 + $0x28] sm:$0xff]  ;;  %v74_v6 = vsel %vm73_vm0, %v441_v0, -inf  ;;  %v75_v7 = vsel %vm73_vm0, %v446_v1, -inf  ;;  %v76_v8 = vsel %vm73_vm0, %v451_v2, -inf }
   0x3   :  { %v477_v9 = vld [vmem:[%s1545_s0 + $0x30] sm:$0xff]  ;;  %v482_v10 = vld [vmem:[%s1545_s0 + $0x38] sm:$0xff]  ;;  %v487_v11 = vld [vmem:[%s1545_s0 + $0x40] sm:$0xff]  ;;  %v77_v12 = vsel %vm73_vm0, %v456_v3, -inf  ;;  %v78_v13 = vsel %vm73_vm0, %v461_v4, -inf  ;;  %v80_v14 = vsel %vm73_vm0, %v466_v5, -inf }
   0x4   :  { %v498_v15 = vld [vmem:[%s1545_s0 + $0x48] sm:$0xff]  ;;  %v503_v16 = vld [vmem:[%s1545_s0 + $0x50] sm:$0xff]  ;;  %v508_v17 = vld [vmem:[%s1545_s0 + $0x58] sm:$0xff]  ;;  %v79_v18 = vmax.f32 %v74_v6, %v78_v13  ;;  %v81_v19 = vmax.f32 %v75_v7, %v80_v14  ;;  %v82_v20 = vsel %vm73_vm0, %v477_v9, -inf  ;;  %v84_v21 = vsel %vm73_vm0, %v482_v10, -inf }
   0x5   :  { %v517_v22 = vld [vmem:[%s1545_s0 + $0x60] sm:$0xff]  ;;  %v522_v23 = vld [vmem:[%s1545_s0 + $0x68] sm:$0xff]  ;;  %v527_v24 = vld [vmem:[%s1545_s0 + $0x70] sm:$0xff]  ;;  %v83_v25 = vmax.f32 %v76_v8, %v82_v20  ;;  %v85_v26 = vmax.f32 %v77_v12, %v84_v21  ;;  %v86_v27 = vsel %vm73_vm0, %v487_v11, -inf  ;;  %v88_v28 = vsel %vm73_vm0, %v498_v15, -inf }
   0x6   :  { %v536_v29 = vld [vmem:[%s1545_s0 + $0x78] sm:$0xff]  ;;  %v541_v30 = vld [vmem:[%s1545_s0 + $0x80] sm:$0xff]  ;;  %v546_v31 = vld [vmem:[%s1545_s0 + $0x88] sm:$0xff]  ;;  %v87_v32 = vmax.f32 %v79_v18, %v86_v27  ;;  %v89_v33 = vmax.f32 %v81_v19, %v88_v28  ;;  %v90_v34 = vsel %vm73_vm0, %v503_v16, -inf  ;;  %v92_v35 = vsel %vm73_vm0, %v508_v17, -inf }
   0x7   :  { %v555_v36 = vld [vmem:[%s1545_s0 + $0x90] sm:$0xff]  ;;  %v560_v37 = vld [vmem:[%s1545_s0 + $0x98] sm:$0xff]  ;;  %v91_v38 = vmax.f32 %v83_v25, %v90_v34  ;;  %v93_v39 = vmax.f32 %v85_v26, %v92_v35  ;;  %v94_v40 = vsel %vm73_vm0, %v517_v22, -inf  ;;  %v96_v41 = vsel %vm73_vm0, %v522_v23, -inf  ;;  %v569_v42 = vld [vmem:[%s1545_s0 + $0xa0] sm:$0xff] }
   0x8   :  { %v574_v43 = vld [vmem:[%s1545_s0 + $0xa8] sm:$0xff]  ;;  %v95_v44 = vmax.f32 %v87_v32, %v94_v40  ;;  %v97_v45 = vmax.f32 %v89_v33, %v96_v41  ;;  %v98_v46 = vsel %vm73_vm0, %v527_v24, -inf  ;;  %v100_v47 = vsel %vm73_vm0, %v536_v29, -inf  ;;  %v583_v48 = vld [vmem:[%s1545_s0 + $0xb0] sm:$0xff]  ;;  %v588_v49 = vld [vmem:[%s1545_s0 + $0xb8] sm:$0xff] }
   0x9   :  { %v99_v50 = vmax.f32 %v91_v38, %v98_v46  ;;  %v101_v51 = vmax.f32 %v93_v39, %v100_v47  ;;  %v102_v52 = vsel %vm73_vm0, %v541_v30, -inf  ;;  %v104_v53 = vsel %vm73_vm0, %v546_v31, -inf  ;;  %v597_v54 = vld [vmem:[%s1545_s0 + $0xc0] sm:$0xff]  ;;  %v602_v55 = vld [vmem:[%s1545_s0 + $0xc8] sm:$0xff]  ;;  %v611_v60 = vld [vmem:[%s1545_s0 + $0xd0] sm:$0xff] }
   0xa   :  { %v103_v56 = vmax.f32 %v95_v44, %v102_v52  ;;  %v105_v57 = vmax.f32 %v97_v45, %v104_v53  ;;  %v106_v58 = vsel %vm73_vm0, %v555_v36, -inf  ;;  %v108_v59 = vsel %vm73_vm0, %v560_v37, -inf  ;;  %v616_v61 = vld [vmem:[%s1545_s0 + $0xd8] sm:$0xff]  ;;  %v625_v8 = vld [vmem:[%s1545_s0 + $0xe0] sm:$0xff]  ;;  %v630_v12 = vld [vmem:[%s1545_s0 + $0xe8] sm:$0xff] }
   0xb   :  { %v107_v62 = vmax.f32 %v99_v50, %v106_v58  ;;  %v109_v63 = vmax.f32 %v101_v51, %v108_v59  ;;  %v110_v6 = vsel %vm73_vm0, %v569_v42, -inf  ;;  %v112_v7 = vsel %vm73_vm0, %v574_v43, -inf  ;;  %v639_v20 = vld [vmem:[%s1545_s0 + $0xf0] sm:$0xff]  ;;  %v644_v21 = vld [vmem:[%s1545_s0 + $0xf8] sm:$0xff]  ;;  %v653_v32 = vld [vmem:[%s1545_s0 + $0x100] sm:$0xff] }
   0xc   :  { %v111_v13 = vmax.f32 %v103_v56, %v110_v6  ;;  %v113_v14 = vmax.f32 %v105_v57, %v112_v7  ;;  %v114_v18 = vsel %vm73_vm0, %v583_v48, -inf  ;;  %v116_v19 = vsel %vm73_vm0, %v588_v49, -inf  ;;  %v658_v33 = vld [vmem:[%s1545_s0 + $0x108] sm:$0xff]  ;;  %v667_v40 = vld [vmem:[%s1545_s0 + $0x110] sm:$0xff]  ;;  %v672_v41 = vld [vmem:[%s1545_s0 + $0x118] sm:$0xff] }
   0xd   :  { %v115_v25 = vmax.f32 %v107_v62, %v114_v18  ;;  %v117_v26 = vmax.f32 %v109_v63, %v116_v19  ;;  %v118_v27 = vsel %vm73_vm0, %v597_v54, -inf  ;;  %v120_v28 = vsel %vm73_vm0, %v602_v55, -inf  ;;  %v681_v50 = vld [vmem:[%s1545_s0 + $0x120] sm:$0xff]  ;;  %v686_v51 = vld [vmem:[%s1545_s0 + $0x128] sm:$0xff]  ;;  %v695_v58 = vld [vmem:[%s1545_s0 + $0x130] sm:$0xff] }
   0xe   :  { %v119_v34 = vmax.f32 %v111_v13, %v118_v27  ;;  %v121_v35 = vmax.f32 %v113_v14, %v120_v28  ;;  %v122_v38 = vsel %vm73_vm0, %v611_v60, -inf  ;;  %v124_v39 = vsel %vm73_vm0, %v616_v61, -inf  ;;  %v700_v59 = vld [vmem:[%s1545_s0 + $0x138] sm:$0xff]  ;;  %v709_v13 = vld [vmem:[%s1545_s0 + $0x140] sm:$0xff]  ;;  %v714_v14 = vld [vmem:[%s1545_s0 + $0x148] sm:$0xff] }
   0xf   :  { %v123_v44 = vmax.f32 %v115_v25, %v122_v38  ;;  %v125_v45 = vmax.f32 %v117_v26, %v124_v39  ;;  %v126_v46 = vsel %vm73_vm0, %v625_v8, -inf  ;;  %v128_v47 = vsel %vm73_vm0, %v630_v12, -inf  ;;  %1568 = vst [vmem:[#allocation2_spill] sm:$0xff] %v714_v14  ;;  %v723_v27 = vld [vmem:[%s1545_s0 + $0x150] sm:$0xff]  ;;  %v728_v28 = vld [vmem:[%s1545_s0 + $0x158] sm:$0xff] }
  0x10   :  { %v127_v52 = vmax.f32 %v119_v34, %v126_v46  ;;  %v129_v53 = vmax.f32 %v121_v35, %v128_v47  ;;  %v130_v56 = vsel %vm73_vm0, %v639_v20, -inf  ;;  %v132_v57 = vsel %vm73_vm0, %v644_v21, -inf  ;;  %1569 = vst [vmem:[#allocation3_spill] sm:$0xff] %v723_v27  ;;  %1570 = vst [vmem:[#allocation4_spill] sm:$0xff] %v728_v28 }
  0x11   :  { %v131_v62 = vmax.f32 %v123_v44, %v130_v56  ;;  %v133_v63 = vmax.f32 %v125_v45, %v132_v57  ;;  %v134_v6 = vsel %vm73_vm0, %v653_v32, -inf  ;;  %v136_v7 = vsel %vm73_vm0, %v658_v33, -inf  ;;  %v737_v44 = vld [vmem:[%s1545_s0 + $0x160] sm:$0xff]  ;;  %v742_v45 = vld [vmem:[%s1545_s0 + $0x168] sm:$0xff]  ;;  %v751_v56 = vld [vmem:[%s1545_s0 + $0x170] sm:$0xff] }
  0x12   :  { %v135_v18 = vmax.f32 %v127_v52, %v134_v6  ;;  %v137_v19 = vmax.f32 %v129_v53, %v136_v7  ;;  %v138_v25 = vsel %vm73_vm0, %v667_v40, -inf  ;;  %v140_v26 = vsel %vm73_vm0, %v672_v41, -inf  ;;  %1571 = vst [vmem:[#allocation5_spill] sm:$0xff] %v737_v44  ;;  %1572 = vst [vmem:[#allocation6_spill] sm:$0xff] %v742_v45  ;;  %v756_v57 = vld [vmem:[%s1545_s0 + $0x178] sm:$0xff] }
  0x13   :  { %v139_v34 = vmax.f32 %v131_v62, %v138_v25  ;;  %v141_v35 = vmax.f32 %v133_v63, %v140_v26  ;;  %v142_v38 = vsel %vm73_vm0, %v681_v50, -inf  ;;  %v144_v39 = vsel %vm73_vm0, %v686_v51, -inf  ;;  %1573 = vst [vmem:[#allocation7_spill] sm:$0xff] %v751_v56  ;;  %1574 = vst [vmem:[#allocation8_spill] sm:$0xff] %v756_v57 }
  0x14   :  { %v143_v46 = vmax.f32 %v135_v18, %v142_v38  ;;  %v145_v47 = vmax.f32 %v137_v19, %v144_v39  ;;  %v146_v52 = vsel %vm73_vm0, %v695_v58, -inf  ;;  %v148_v53 = vsel %vm73_vm0, %v700_v59, -inf  ;;  %v765_v18 = vld [vmem:[%s1545_s0 + $0x180] sm:$0xff]  ;;  %v770_v19 = vld [vmem:[%s1545_s0 + $0x188] sm:$0xff]  ;;  %v779_v38 = vld [vmem:[%s1545_s0 + $0x190] sm:$0xff] }
  0x15   :  { %v147_v62 = vmax.f32 %v139_v34, %v146_v52  ;;  %v149_v63 = vmax.f32 %v141_v35, %v148_v53  ;;  %v150_v6 = vsel %vm73_vm0, %v709_v13, -inf  ;;  %v152_v7 = vsel %vm73_vm0, %v714_v14, -inf  ;;  %1575 = vst [vmem:[#allocation9_spill] sm:$0xff] %v765_v18  ;;  %1576 = vst [vmem:[#allocation10_spill] sm:$0xff] %v770_v19  ;;  %v784_v39 = vld [vmem:[%s1545_s0 + $0x198] sm:$0xff] }
  0x16   :  { %v151_v25 = vmax.f32 %v143_v46, %v150_v6  ;;  %v153_v26 = vmax.f32 %v145_v47, %v152_v7  ;;  %v154_v34 = vsel %vm73_vm0, %v723_v27, -inf  ;;  %v156_v35 = vsel %vm73_vm0, %v728_v28, -inf  ;;  %1577 = vst [vmem:[#allocation11_spill] sm:$0xff] %v779_v38  ;;  %1578 = vst [vmem:[#allocation12_spill] sm:$0xff] %v784_v39  ;;  %v793_v6 = vld [vmem:[%s1545_s0 + $0x1a0] sm:$0xff]  ;;  %v798_v7 = vld [vmem:[%s1545_s0 + $0x1a8] sm:$0xff] }
  0x17   :  { %v155_v52 = vmax.f32 %v147_v62, %v154_v34  ;;  %v157_v46 = vmax.f32 %v149_v63, %v156_v35  ;;  %v158_v47 = vsel %vm73_vm0, %v737_v44, -inf  ;;  %v160_v53 = vsel %vm73_vm0, %v742_v45, -inf  ;;  %1579 = vst [vmem:[#allocation13_spill] sm:$0xff] %v793_v6  ;;  %1580 = vst [vmem:[#allocation14_spill] sm:$0xff] %v798_v7  ;;  %v807_v34 = vld [vmem:[%s1545_s0 + $0x1b0] sm:$0xff]  ;;  %v812_v35 = vld [vmem:[%s1545_s0 + $0x1b8] sm:$0xff] }
  0x18   :  { %v159_v28 = vmax.f32 %v151_v25, %v158_v47  ;;  %v161_v27 = vmax.f32 %v153_v26, %v160_v53  ;;  %v162_v62 = vsel %vm73_vm0, %v751_v56, -inf  ;;  %v164_v63 = vsel %vm73_vm0, %v756_v57, -inf  ;;  %1581 = vst [vmem:[#allocation15_spill] sm:$0xff] %v807_v34  ;;  %1582 = vst [vmem:[#allocation16_spill] sm:$0xff] %v812_v35  ;;  %v821_v47 = vld [vmem:[%s1545_s0 + $0x1c0] sm:$0xff]  ;;  %v826_v53 = vld [vmem:[%s1545_s0 + $0x1c8] sm:$0xff] }
  0x19   :  { %v163_v45 = vmax.f32 %v155_v52, %v162_v62  ;;  %v165_v44 = vmax.f32 %v157_v46, %v164_v63  ;;  %v166_v25 = vsel %vm73_vm0, %v765_v18, -inf  ;;  %v168_v26 = vsel %vm73_vm0, %v770_v19, -inf  ;;  %1583 = vst [vmem:[#allocation17_spill] sm:$0xff] %v821_v47  ;;  %1584 = vst [vmem:[#allocation18_spill] sm:$0xff] %v826_v53  ;;  %v835_v62 = vld [vmem:[%s1545_s0 + $0x1d0] sm:$0xff]  ;;  %v840_v63 = vld [vmem:[%s1545_s0 + $0x1d8] sm:$0xff] }
  0x1a   :  { %v167_v57 = vmax.f32 %v159_v28, %v166_v25  ;;  %v169_v56 = vmax.f32 %v161_v27, %v168_v26  ;;  %v170_v52 = vsel %vm73_vm0, %v779_v38, -inf  ;;  %v172_v46 = vsel %vm73_vm0, %v784_v39, -inf  ;;  %1585 = vst [vmem:[#allocation19_spill] sm:$0xff] %v840_v63  ;;  %v849_v25 = vld [vmem:[%s1545_s0 + $0x1e0] sm:$0xff]  ;;  %v854_v26 = vld [vmem:[%s1545_s0 + $0x1e8] sm:$0xff] }
  0x1b   :  { %v171_v19 = vmax.f32 %v163_v45, %v170_v52  ;;  %v173_v18 = vmax.f32 %v165_v44, %v172_v46  ;;  %v174_v27 = vsel %vm73_vm0, %v793_v6, -inf  ;;  %v176_v28 = vsel %vm73_vm0, %v798_v7, -inf  ;;  %1586 = vst [vmem:[#allocation20_spill] sm:$0xff] %v849_v25  ;;  %1587 = vst [vmem:[#allocation21_spill] sm:$0xff] %v854_v26  ;;  %v863_v52 = vld [vmem:[%s1545_s0 + $0x1f0] sm:$0xff]  ;;  %v868_v46 = vld [vmem:[%s1545_s0 + $0x1f8] sm:$0xff] }
  0x1c   :  { %v175_v39 = vmax.f32 %v167_v57, %v174_v27  ;;  %v177_v38 = vmax.f32 %v169_v56, %v176_v28  ;;  %v178_v44 = vsel %vm73_vm0, %v807_v34, -inf  ;;  %v180_v45 = vsel %vm73_vm0, %v812_v35, -inf  ;;  %1588 = vst [vmem:[#allocation22_spill] sm:$0xff] %v863_v52  ;;  %v877_v27 = vld [vmem:[%s1545_s0 + $0x200] sm:$0x3] }
  0x1d   :  { %v179_v7 = vmax.f32 %v171_v19, %v178_v44  ;;  %v181_v6 = vmax.f32 %v173_v18, %v180_v45  ;;  %v182_v56 = vsel %vm73_vm0, %v821_v47, -inf  ;;  %v184_v57 = vsel %vm73_vm0, %v826_v53, -inf }
  0x1e   :  { %v183_v28 = vmax.f32 %v175_v39, %v182_v56  ;;  %v185_v35 = vmax.f32 %v177_v38, %v184_v57  ;;  %v186_v34 = vsel %vm73_vm0, %v835_v62, -inf  ;;  %v188_v19 = vsel %vm73_vm0, %v840_v63, -inf }
  0x1f   :  { %v187_v18 = vmax.f32 %v179_v7, %v186_v34  ;;  %v189_v44 = vmax.f32 %v181_v6, %v188_v19  ;;  %v190_v45 = vsel %vm73_vm0, %v849_v25, -inf  ;;  %v192_v53 = vsel %vm73_vm0, %v854_v26, -inf }
  0x20   :  { %v191_v47 = vmax.f32 %v183_v28, %v190_v45  ;;  %v193_v14 = vmax.f32 %v185_v35, %v192_v53  ;;  %v194_v39 = vsel %vm73_vm0, %v863_v52, -inf  ;;  %v196_v38 = vsel %vm73_vm0, %v868_v46, -inf }
  0x21   :  { %v195_v56 = vmax.f32 %v187_v18, %v194_v39  ;;  %v197_v57 = vmax.f32 %v189_v44, %v196_v38  ;;  %v199_v7 = vsel %vm198_vm1, %v877_v27, -inf  ;;  %v1589_v39 = vld [vmem:[#allocation2_spill] sm:$0xff]  ;;  %v1590_v38 = vld [vmem:[#allocation3_spill] sm:$0xff] }
  0x22   :  { %v200_v6 = vmax.f32 %v191_v47, %v199_v7  ;;  %v1593_v7 = vld [vmem:[#allocation6_spill] sm:$0xff] }
  0x23   :  { %v202_v34 = vmax.f32 %v195_v56, %v197_v57  ;;  %v1591_v56 = vld [vmem:[#allocation4_spill] sm:$0xff]  ;;  %v1592_v57 = vld [vmem:[#allocation5_spill] sm:$0xff] }
  0x24   :  { %v201_v19 = vmax.f32 %v200_v6, %v193_v14  ;;  %v1594_v6 = vld [vmem:[#allocation7_spill] sm:$0xff] }
  0x26   :  { %v203_v25 = vmax.f32 %v201_v19, %v202_v34  ;;  %v1595_v19 = vld [vmem:[#allocation8_spill] sm:$0xff] }
  0x28   :  { %204 = vmax.xlane.f32.xlu0 %v203_v25 }
  0xb5   :  { %v205_v63 = vpop.xlane.xlu0 %204 }
  0xb6   :  { %v206_v26 = vrot.slane %v205_v63, 4 }
  0xb8   :  { %v207_v28 = vmax.f32 %v205_v63, %v206_v26 }
  0xba   :  { %v208_v35 = vrot.slane %v207_v28, 2 }
  0xbc   :  { %v209_v53 = vmax.f32 %v207_v28, %v208_v35  ;;  %v1596_v35 = vld [vmem:[#allocation9_spill] sm:$0xff] }
  0xbe   :  { %v210_v45 = vrot.slane %v209_v53, 1 }
  0xc0   :  { %v211_v52 = vmax.f32 %v209_v53, %v210_v45  ;;  %v1597_v45 = vld [vmem:[#allocation10_spill] sm:$0xff] }
  0xc2   :  { %420 = vpush %v211_v52 }
  0xf3   :  { %s421_s0 = spop %420 }
  0xf4   :  { %s213_s21 = smax.f32 %s427_s20, %s421_s0 }
  0xf5   :  { %s214_s22 = sadd.f32 1e-05, %s213_s21 }
  0xf7   :  { %v215_v18 = vstv %s214_s22 }
  0xf8   :  { %425 = vrcp.f32 %v215_v18 }
 0x102   :  { %v426_v44 = vpop.eup %425 }
 0x103   :  { %422 = vpush %v426_v44  ;;  %v1599_v44 = vld [vmem:[#allocation11_spill] sm:$0xff] }
 0x134   :  { %s423_s23 = spop %422 }
 0x135   :  { %v893_v14 = vstv %s423_s23 }
 0x136   :  { %v897_v47 = vmul.f32 %v893_v14, %v441_v0  ;;  %v901_v63 = vmul.f32 %v893_v14, %v446_v1  ;;  %v905_v25 = vmul.f32 %v893_v14, %v451_v2  ;;  %v909_v26 = vmul.f32 %v893_v14, %v456_v3 }
 0x137   :  { %v913_v52 = vmul.f32 %v893_v14, %v461_v4  ;;  %v917_v0 = vmul.f32 %v893_v14, %v466_v5  ;;  %v921_v1 = vmul.f32 %v893_v14, %v477_v9  ;;  %v925_v2 = vmul.f32 %v893_v14, %v482_v10 }
 0x138   :  { %v929_v3 = vmul.f32 %v893_v14, %v487_v11  ;;  %v933_v4 = vmul.f32 %v893_v14, %v498_v15  ;;  %v937_v5 = vmul.f32 %v893_v14, %v503_v16  ;;  %v941_v9 = vmul.f32 %v893_v14, %v508_v17 }
 0x139   :  { %v945_v10 = vmul.f32 %v893_v14, %v517_v22  ;;  %v949_v11 = vmul.f32 %v893_v14, %v522_v23  ;;  %v953_v15 = vmul.f32 %v893_v14, %v527_v24  ;;  %v957_v16 = vmul.f32 %v893_v14, %v536_v29 }
 0x13a   :  { %v961_v17 = vmul.f32 %v893_v14, %v541_v30  ;;  %v965_v22 = vmul.f32 %v893_v14, %v546_v31  ;;  %v969_v23 = vmul.f32 %v893_v14, %v555_v36  ;;  %v973_v24 = vmul.f32 %v893_v14, %v560_v37 }
 0x13b   :  { %v977_v29 = vmul.f32 %v893_v14, %v569_v42  ;;  %v981_v30 = vmul.f32 %v893_v14, %v574_v43  ;;  %v985_v31 = vmul.f32 %v893_v14, %v583_v48  ;;  %v989_v36 = vmul.f32 %v893_v14, %v588_v49 }
 0x13c   :  { %v993_v37 = vmul.f32 %v893_v14, %v597_v54  ;;  %v997_v42 = vmul.f32 %v893_v14, %v602_v55  ;;  %v1001_v43 = vmul.f32 %v893_v14, %v611_v60  ;;  %v1005_v48 = vmul.f32 %v893_v14, %v616_v61 }
 0x13d   :  { %v1009_v49 = vmul.f32 %v893_v14, %v625_v8  ;;  %v1013_v54 = vmul.f32 %v893_v14, %v630_v12  ;;  %v1017_v55 = vmul.f32 %v893_v14, %v639_v20  ;;  %v1021_v60 = vmul.f32 %v893_v14, %v644_v21 }
 0x13e   :  { %v1025_v61 = vmul.f32 %v893_v14, %v653_v32  ;;  %v1029_v8 = vmul.f32 %v893_v14, %v658_v33  ;;  %v1033_v12 = vmul.f32 %v893_v14, %v667_v40  ;;  %v1037_v20 = vmul.f32 %v893_v14, %v672_v41 }
 0x13f   :  { %v1041_v21 = vmul.f32 %v893_v14, %v681_v50  ;;  %v1045_v32 = vmul.f32 %v893_v14, %v686_v51  ;;  %v1049_v33 = vmul.f32 %v893_v14, %v695_v58  ;;  %v1053_v40 = vmul.f32 %v893_v14, %v700_v59 }
 0x140   :  { %v1057_v41 = vmul.f32 %v893_v14, %v709_v13  ;;  %v1061_v50 = vmul.f32 %v893_v14, %v1589_v39  ;;  %v1065_v51 = vmul.f32 %v893_v14, %v1590_v38  ;;  %v1069_v58 = vmul.f32 %v893_v14, %v1591_v56  ;;  %v1601_v38 = vld [vmem:[#allocation12_spill] sm:$0xff] }
 0x141   :  { %v1073_v59 = vmul.f32 %v893_v14, %v1592_v57  ;;  %v1077_v13 = vmul.f32 %v893_v14, %v1593_v7  ;;  %v1081_v34 = vmul.f32 %v893_v14, %v1594_v6  ;;  %v1085_v28 = vmul.f32 %v893_v14, %v1595_v19  ;;  %v1603_v57 = vld [vmem:[#allocation13_spill] sm:$0xff]  ;;  %v1604_v6 = vld [vmem:[#allocation14_spill] sm:$0xff] }
 0x142   :  { %v1089_v53 = vmul.f32 %v893_v14, %v1596_v35  ;;  %v1093_v18 = vmul.f32 %v893_v14, %v1597_v45  ;;  %v1097_v39 = vmul.f32 %v893_v14, %v1599_v44  ;;  %v1101_v56 = vmul.f32 %v893_v14, %v1601_v38  ;;  %v1606_v35 = vld [vmem:[#allocation15_spill] sm:$0xff] }
 0x143   :  { %v1105_v7 = vmul.f32 %v893_v14, %v1603_v57  ;;  %v1109_v19 = vmul.f32 %v893_v14, %v1604_v6  ;;  %v1113_v45 = vmul.f32 %v893_v14, %v1606_v35  ;;  %v1129_v6 = vmul.f32 %v893_v14, %v835_v62 }
 0x144   :  { %1598 = vst [vmem:[#allocation2_spill] sm:$0xff] %v1093_v18  ;;  %1600 = vst [vmem:[#allocation3_spill] sm:$0xff] %v1097_v39  ;;  %v1608_v18 = vld [vmem:[#allocation16_spill] sm:$0xff]  ;;  %v1610_v39 = vld [vmem:[#allocation17_spill] sm:$0xff]  ;;  %v1149_v62 = vmul.f32 %v893_v14, %v868_v46  ;;  %v288_v46 = vsel %vm73_vm0, %v913_v52, 0.0  ;;  %v296_v52 = vsel %vm73_vm0, %v945_v10, 0.0 }
 0x145   :  { %1602 = vst [vmem:[#allocation4_spill] sm:$0xff] %v1101_v56  ;;  %1605 = vst [vmem:[#allocation5_spill] sm:$0xff] %v1109_v19  ;;  %v1117_v44 = vmul.f32 %v893_v14, %v1608_v18  ;;  %v1121_v38 = vmul.f32 %v893_v14, %v1610_v39  ;;  %v1612_v56 = vld [vmem:[#allocation18_spill] sm:$0xff]  ;;  %v1613_v19 = vld [vmem:[#allocation19_spill] sm:$0xff]  ;;  %v304_v10 = vsel %vm73_vm0, %v977_v29, 0.0  ;;  %v312_v29 = vsel %vm73_vm0, %v1009_v49, 0.0 }
 0x146   :  { %1607 = vst [vmem:[#allocation6_spill] sm:$0xff] %v1113_v45  ;;  %v1125_v57 = vmul.f32 %v893_v14, %v1612_v56  ;;  %v1133_v35 = vmul.f32 %v893_v14, %v1613_v19  ;;  %v1614_v45 = vld [vmem:[#allocation20_spill] sm:$0xff]  ;;  %1618 = vst [vmem:[#allocation10_spill] sm:$0xff] %v1149_v62  ;;  %v1153_v19 = vmul.f32 %v893_v14, %v877_v27  ;;  %v289_v62 = vsel %vm73_vm0, %v917_v0, 0.0 }
 0x147   :  { %1609 = vst [vmem:[#allocation7_spill] sm:$0xff] %v1117_v44  ;;  %1611 = vst [vmem:[#allocation8_spill] sm:$0xff] %v1121_v38  ;;  %v1137_v18 = vmul.f32 %v893_v14, %v1614_v45  ;;  %v1616_v44 = vld [vmem:[#allocation21_spill] sm:$0xff]  ;;  %v1617_v38 = vld [vmem:[#allocation22_spill] sm:$0xff]  ;;  %v284_v45 = vsel %vm73_vm0, %v897_v47, 0.0  ;;  %v290_v27 = vsel %vm73_vm0, %v921_v1, 0.0 }
 0x148   :  { %v1141_v39 = vmul.f32 %v893_v14, %v1616_v44  ;;  %v1145_v56 = vmul.f32 %v893_v14, %v1617_v38  ;;  %v286_v44 = vsel %vm73_vm0, %v905_v25, 0.0  ;;  %v287_v38 = vsel %vm73_vm0, %v909_v26, 0.0  ;;  %350 = vst.msk [vmem:[%s1546_s1] sm:$0xff] %vm349_vm2, %v284_v45  ;;  %354 = vst.msk [vmem:[%s1546_s1 + $0x20] sm:$0xff] %vm349_vm2, %v288_v46 }
 0x149   :  { %1615 = vst [vmem:[#allocation9_spill] sm:$0xff] %v1137_v18  ;;  %v285_v18 = vsel %vm73_vm0, %v901_v63, 0.0  ;;  %352 = vst.msk [vmem:[%s1546_s1 + $0x10] sm:$0xff] %vm349_vm2, %v286_v44  ;;  %v291_v14 = vsel %vm73_vm0, %v925_v2, 0.0  ;;  %v292_v47 = vsel %vm73_vm0, %v929_v3, 0.0  ;;  %v293_v63 = vsel %vm73_vm0, %v933_v4, 0.0 }
 0x14a   :  { %351 = vst.msk [vmem:[%s1546_s1 + $0x8] sm:$0xff] %vm349_vm2, %v285_v18  ;;  %v294_v25 = vsel %vm73_vm0, %v937_v5, 0.0  ;;  %353 = vst.msk [vmem:[%s1546_s1 + $0x18] sm:$0xff] %vm349_vm2, %v287_v38  ;;  %v295_v26 = vsel %vm73_vm0, %v941_v9, 0.0  ;;  %v297_v0 = vsel %vm73_vm0, %v949_v11, 0.0  ;;  %v298_v1 = vsel %vm73_vm0, %v953_v15, 0.0 }
 0x14b   :  { %355 = vst.msk [vmem:[%s1546_s1 + $0x28] sm:$0xff] %vm349_vm2, %v289_v62  ;;  %356 = vst.msk [vmem:[%s1546_s1 + $0x30] sm:$0xff] %vm349_vm2, %v290_v27  ;;  %v299_v2 = vsel %vm73_vm0, %v957_v16, 0.0  ;;  %v300_v3 = vsel %vm73_vm0, %v961_v17, 0.0  ;;  %v301_v4 = vsel %vm73_vm0, %v965_v22, 0.0  ;;  %v302_v5 = vsel %vm73_vm0, %v969_v23, 0.0 }
 0x14c   :  { %357 = vst.msk [vmem:[%s1546_s1 + $0x38] sm:$0xff] %vm349_vm2, %v291_v14  ;;  %358 = vst.msk [vmem:[%s1546_s1 + $0x40] sm:$0xff] %vm349_vm2, %v292_v47  ;;  %v303_v9 = vsel %vm73_vm0, %v973_v24, 0.0  ;;  %v305_v11 = vsel %vm73_vm0, %v981_v30, 0.0  ;;  %v306_v15 = vsel %vm73_vm0, %v985_v31, 0.0  ;;  %v307_v16 = vsel %vm73_vm0, %v989_v36, 0.0 }
 0x14d   :  { %359 = vst.msk [vmem:[%s1546_s1 + $0x48] sm:$0xff] %vm349_vm2, %v293_v63  ;;  %360 = vst.msk [vmem:[%s1546_s1 + $0x50] sm:$0xff] %vm349_vm2, %v294_v25  ;;  %v308_v17 = vsel %vm73_vm0, %v993_v37, 0.0  ;;  %v309_v22 = vsel %vm73_vm0, %v997_v42, 0.0  ;;  %v310_v23 = vsel %vm73_vm0, %v1001_v43, 0.0  ;;  %v311_v24 = vsel %vm73_vm0, %v1005_v48, 0.0 }
 0x14e   :  { %361 = vst.msk [vmem:[%s1546_s1 + $0x58] sm:$0xff] %vm349_vm2, %v295_v26  ;;  %362 = vst.msk [vmem:[%s1546_s1 + $0x60] sm:$0xff] %vm349_vm2, %v296_v52  ;;  %v313_v30 = vsel %vm73_vm0, %v1013_v54, 0.0  ;;  %v314_v31 = vsel %vm73_vm0, %v1017_v55, 0.0  ;;  %v315_v36 = vsel %vm73_vm0, %v1021_v60, 0.0  ;;  %v316_v37 = vsel %vm73_vm0, %v1025_v61, 0.0 }
 0x14f   :  { %363 = vst.msk [vmem:[%s1546_s1 + $0x68] sm:$0xff] %vm349_vm2, %v297_v0  ;;  %364 = vst.msk [vmem:[%s1546_s1 + $0x70] sm:$0xff] %vm349_vm2, %v298_v1  ;;  %v317_v42 = vsel %vm73_vm0, %v1029_v8, 0.0  ;;  %v318_v43 = vsel %vm73_vm0, %v1033_v12, 0.0  ;;  %v319_v48 = vsel %vm73_vm0, %v1037_v20, 0.0  ;;  %v320_v49 = vsel %vm73_vm0, %v1041_v21, 0.0 }
 0x150   :  { %365 = vst.msk [vmem:[%s1546_s1 + $0x78] sm:$0xff] %vm349_vm2, %v299_v2  ;;  %366 = vst.msk [vmem:[%s1546_s1 + $0x80] sm:$0xff] %vm349_vm2, %v300_v3  ;;  %v321_v54 = vsel %vm73_vm0, %v1045_v32, 0.0  ;;  %v322_v55 = vsel %vm73_vm0, %v1049_v33, 0.0  ;;  %v323_v60 = vsel %vm73_vm0, %v1053_v40, 0.0  ;;  %v324_v61 = vsel %vm73_vm0, %v1057_v41, 0.0 }
 0x151   :  { %367 = vst.msk [vmem:[%s1546_s1 + $0x88] sm:$0xff] %vm349_vm2, %v301_v4  ;;  %368 = vst.msk [vmem:[%s1546_s1 + $0x90] sm:$0xff] %vm349_vm2, %v302_v5  ;;  %v325_v8 = vsel %vm73_vm0, %v1061_v50, 0.0  ;;  %v326_v12 = vsel %vm73_vm0, %v1065_v51, 0.0  ;;  %v327_v20 = vsel %vm73_vm0, %v1069_v58, 0.0  ;;  %v328_v21 = vsel %vm73_vm0, %v1073_v59, 0.0 }
 0x152   :  { %369 = vst.msk [vmem:[%s1546_s1 + $0x98] sm:$0xff] %vm349_vm2, %v303_v9  ;;  %370 = vst.msk [vmem:[%s1546_s1 + $0xa0] sm:$0xff] %vm349_vm2, %v304_v10  ;;  %v329_v32 = vsel %vm73_vm0, %v1077_v13, 0.0  ;;  %v330_v33 = vsel %vm73_vm0, %v1081_v34, 0.0  ;;  %v331_v40 = vsel %vm73_vm0, %v1085_v28, 0.0  ;;  %v332_v41 = vsel %vm73_vm0, %v1089_v53, 0.0 }
 0x153   :  { %371 = vst.msk [vmem:[%s1546_s1 + $0xa8] sm:$0xff] %vm349_vm2, %v305_v11  ;;  %372 = vst.msk [vmem:[%s1546_s1 + $0xb0] sm:$0xff] %vm349_vm2, %v306_v15  ;;  %v1619_v50 = vld [vmem:[#allocation2_spill] sm:$0xff]  ;;  %v1620_v58 = vld [vmem:[#allocation3_spill] sm:$0xff]  ;;  %v336_v28 = vsel %vm73_vm0, %v1105_v7, 0.0  ;;  %v341_v27 = vsel %vm73_vm0, %v1125_v57, 0.0 }
 0x154   :  { %373 = vst.msk [vmem:[%s1546_s1 + $0xb8] sm:$0xff] %vm349_vm2, %v307_v16  ;;  %374 = vst.msk [vmem:[%s1546_s1 + $0xc0] sm:$0xff] %vm349_vm2, %v308_v17  ;;  %v333_v51 = vsel %vm73_vm0, %v1619_v50, 0.0  ;;  %v334_v59 = vsel %vm73_vm0, %v1620_v58, 0.0  ;;  %v1621_v13 = vld [vmem:[#allocation4_spill] sm:$0xff]  ;;  %v1622_v53 = vld [vmem:[#allocation5_spill] sm:$0xff] }
 0x155   :  { %375 = vst.msk [vmem:[%s1546_s1 + $0xc8] sm:$0xff] %vm349_vm2, %v309_v22  ;;  %376 = vst.msk [vmem:[%s1546_s1 + $0xd0] sm:$0xff] %vm349_vm2, %v310_v23  ;;  %v335_v34 = vsel %vm73_vm0, %v1621_v13, 0.0  ;;  %v337_v18 = vsel %vm73_vm0, %v1622_v53, 0.0  ;;  %v1623_v62 = vld [vmem:[#allocation6_spill] sm:$0xff]  ;;  %v1624_v7 = vld [vmem:[#allocation7_spill] sm:$0xff] }
 0x156   :  { %377 = vst.msk [vmem:[%s1546_s1 + $0xd8] sm:$0xff] %vm349_vm2, %v311_v24  ;;  %378 = vst.msk [vmem:[%s1546_s1 + $0xe0] sm:$0xff] %vm349_vm2, %v312_v29  ;;  %v338_v45 = vsel %vm73_vm0, %v1623_v62, 0.0  ;;  %v339_v44 = vsel %vm73_vm0, %v1624_v7, 0.0  ;;  %v1625_v38 = vld [vmem:[#allocation8_spill] sm:$0xff]  ;;  %v342_v14 = vsel %vm73_vm0, %v1129_v6, 0.0 }
 0x157   :  { %379 = vst.msk [vmem:[%s1546_s1 + $0xe8] sm:$0xff] %vm349_vm2, %v313_v30  ;;  %380 = vst.msk [vmem:[%s1546_s1 + $0xf0] sm:$0xff] %vm349_vm2, %v314_v31  ;;  %v340_v46 = vsel %vm73_vm0, %v1625_v38, 0.0  ;;  %v343_v57 = vsel %vm73_vm0, %v1133_v35, 0.0  ;;  %v1626_v6 = vld [vmem:[#allocation9_spill] sm:$0xff]  ;;  %v345_v63 = vsel %vm73_vm0, %v1141_v39, 0.0 }
 0x158   :  { %381 = vst.msk [vmem:[%s1546_s1 + $0xf8] sm:$0xff] %vm349_vm2, %v315_v36  ;;  %382 = vst.msk [vmem:[%s1546_s1 + $0x100] sm:$0xff] %vm349_vm2, %v316_v37  ;;  %v344_v47 = vsel %vm73_vm0, %v1626_v6, 0.0  ;;  %v346_v25 = vsel %vm73_vm0, %v1145_v56, 0.0  ;;  %v1627_v35 = vld [vmem:[#allocation10_spill] sm:$0xff]  ;;  %v348_v56 = vsel %vm73_vm0, %v1153_v19, 0.0 }
 0x159   :  { %383 = vst.msk [vmem:[%s1546_s1 + $0x108] sm:$0xff] %vm349_vm2, %v317_v42  ;;  %384 = vst.msk [vmem:[%s1546_s1 + $0x110] sm:$0xff] %vm349_vm2, %v318_v43  ;;  %v347_v39 = vsel %vm73_vm0, %v1627_v35, 0.0 }
 0x15a   :  { %385 = vst.msk [vmem:[%s1546_s1 + $0x118] sm:$0xff] %vm349_vm2, %v319_v48  ;;  %386 = vst.msk [vmem:[%s1546_s1 + $0x120] sm:$0xff] %vm349_vm2, %v320_v49 }
 0x15b   :  { %387 = vst.msk [vmem:[%s1546_s1 + $0x128] sm:$0xff] %vm349_vm2, %v321_v54  ;;  %388 = vst.msk [vmem:[%s1546_s1 + $0x130] sm:$0xff] %vm349_vm2, %v322_v55 }
 0x15c   :  { %389 = vst.msk [vmem:[%s1546_s1 + $0x138] sm:$0xff] %vm349_vm2, %v323_v60  ;;  %390 = vst.msk [vmem:[%s1546_s1 + $0x140] sm:$0xff] %vm349_vm2, %v324_v61 }
 0x15d   :  { %391 = vst.msk [vmem:[%s1546_s1 + $0x148] sm:$0xff] %vm349_vm2, %v325_v8  ;;  %392 = vst.msk [vmem:[%s1546_s1 + $0x150] sm:$0xff] %vm349_vm2, %v326_v12 }
 0x15e   :  { %393 = vst.msk [vmem:[%s1546_s1 + $0x158] sm:$0xff] %vm349_vm2, %v327_v20  ;;  %394 = vst.msk [vmem:[%s1546_s1 + $0x160] sm:$0xff] %vm349_vm2, %v328_v21 }
 0x15f   :  { %395 = vst.msk [vmem:[%s1546_s1 + $0x168] sm:$0xff] %vm349_vm2, %v329_v32  ;;  %396 = vst.msk [vmem:[%s1546_s1 + $0x170] sm:$0xff] %vm349_vm2, %v330_v33 }
 0x160   :  { %397 = vst.msk [vmem:[%s1546_s1 + $0x178] sm:$0xff] %vm349_vm2, %v331_v40  ;;  %398 = vst.msk [vmem:[%s1546_s1 + $0x180] sm:$0xff] %vm349_vm2, %v332_v41 }
 0x161   :  { %399 = vst.msk [vmem:[%s1546_s1 + $0x188] sm:$0xff] %vm349_vm2, %v333_v51  ;;  %400 = vst.msk [vmem:[%s1546_s1 + $0x190] sm:$0xff] %vm349_vm2, %v334_v59 }
 0x162   :  { %401 = vst.msk [vmem:[%s1546_s1 + $0x198] sm:$0xff] %vm349_vm2, %v335_v34  ;;  %402 = vst.msk [vmem:[%s1546_s1 + $0x1a0] sm:$0xff] %vm349_vm2, %v336_v28 }
 0x163   :  { %403 = vst.msk [vmem:[%s1546_s1 + $0x1a8] sm:$0xff] %vm349_vm2, %v337_v18  ;;  %404 = vst.msk [vmem:[%s1546_s1 + $0x1b0] sm:$0xff] %vm349_vm2, %v338_v45 }
 0x164   :  { %405 = vst.msk [vmem:[%s1546_s1 + $0x1b8] sm:$0xff] %vm349_vm2, %v339_v44  ;;  %406 = vst.msk [vmem:[%s1546_s1 + $0x1c0] sm:$0xff] %vm349_vm2, %v340_v46 }
 0x165   :  { %407 = vst.msk [vmem:[%s1546_s1 + $0x1c8] sm:$0xff] %vm349_vm2, %v341_v27  ;;  %408 = vst.msk [vmem:[%s1546_s1 + $0x1d0] sm:$0xff] %vm349_vm2, %v342_v14 }
 0x166   :  { %409 = vst.msk [vmem:[%s1546_s1 + $0x1d8] sm:$0xff] %vm349_vm2, %v343_v57  ;;  %410 = vst.msk [vmem:[%s1546_s1 + $0x1e0] sm:$0xff] %vm349_vm2, %v344_v47 }
 0x167   :  { %411 = vst.msk [vmem:[%s1546_s1 + $0x1e8] sm:$0xff] %vm349_vm2, %v345_v63  ;;  %412 = vst.msk [vmem:[%s1546_s1 + $0x1f0] sm:$0xff] %vm349_vm2, %v346_v25 }
 0x168   :  { %413 = vst.msk [vmem:[%s1546_s1 + $0x1f8] sm:$0xff] %vm349_vm2, %v347_v39 }
 0x169   :  { %415 = vst.msk [vmem:[%s1546_s1 + $0x200] sm:$0x3] %vm414_vm3, %v348_v56 }

</bundles_post_ra>
